<compile_context>
chip_gen: v7x
topology: tpu7x:2x2x1
jax: 0.10.0
libtpu: 0.0.40
codegen_flags: <defaults>
</compile_context>

<pallas_src>
import math

import jax
import jax.numpy as jnp
from jax.experimental import pallas as pl
from jax.experimental.pallas import tpu as pltpu


OUT_LANES = 128  # lane-dense output width (only column 0 is the real logit)


def _round_up(x, m):
    return (x + m - 1) // m * m


def _discriminator_kernel(img_ref, cls_ref, w1a_ref, w1b_ref, b1_ref,
                          w2_ref, b2_ref, o_ref, acc_ref):
    """One (batch-tile, H-slab) step of fc1 -> LeakyReLU(0.2) -> fc2.

    img_ref: (TB, F)          f32 image-feature tile (cast to bf16 in-kernel)
    cls_ref: (TB, C)          f32 class-embedding tile
    w1a_ref: (F, TH)          bf16 fc1 weight slab for img rows
    w1b_ref: (C, TH)          bf16 fc1 weight slab for cls rows
    b1_ref : (1, TH)          f32 fc1 bias slab
    w2_ref : (1, TH)          f32 fc2 weight slab (row vector)
    b2_ref : (1,)             f32 fc2 bias (SMEM scalar)
    o_ref  : (TB, OUT_LANES)  f32 output tile (column 0 = validity)
    acc_ref: (TB, 1)          f32 fc2 accumulator (persists across H slabs)
    """
    j = pl.program_id(1)

    @pl.when(j == 0)
    def _():
        acc_ref[...] = jnp.zeros_like(acc_ref)

    # In-kernel activation cast (VPU filler hidden under MXU work).
    img = img_ref[...].astype(w1a_ref.dtype)
    cls = cls_ref[...].astype(w1b_ref.dtype)

    # fc1 for this H slab, concat folded into split matmuls:
    #   x @ W1[:, jTH:(j+1)TH] == img @ W1a_blk + cls @ W1b_blk
    h = jnp.dot(img, w1a_ref[...], preferred_element_type=jnp.float32)
    h = h + jnp.dot(cls, w1b_ref[...], preferred_element_type=jnp.float32)
    h = h + b1_ref[...]
    # LeakyReLU(negative_slope=0.2): max(h, 0.2*h)
    h = jnp.maximum(h, 0.2 * h)

    # fc2 partial for this H slab: (TB, TH) * (1, TH) -> lane-reduce -> (TB, 1).
    # Runs on VPU/XLU slots while the MXU is busy with the next fc1 slab.
    acc_ref[...] += jnp.sum(h * w2_ref[...], axis=-1, keepdims=True)

    @pl.when(j == pl.num_programs(1) - 1)
    def _():
        v = acc_ref[...] + b2_ref[0]
        o_ref[...] = jnp.broadcast_to(v, o_ref.shape).astype(o_ref.dtype)


def discriminator_forward(img_feature, class_embed, params, *,
                          block_b=256, block_h=512):
    """JAX wrapper around the weight-streaming fused MLP Pallas kernel."""
    w1a, w1b, b1 = params["w1a"], params["w1b"], params["b1"]
    w2, b2 = params["w2"], params["b2"]          # w2: (1, H) f32 row vector

    B, F_dim = img_feature.shape
    C_dim = class_embed.shape[1]
    H = w1a.shape[1]
    w_dtype = w1a.dtype
    wbpe = jnp.dtype(w_dtype).itemsize

    # H (reduction) tile: multiple of 128 lanes that divides H, else full H.
    th = min(block_h, H)
    if H % th != 0 or th % 128 != 0:
        th = H

    # Batch tile: multiple of 16 (bf16 sublane packing); split into >= 2 tiles
    # when possible so the "parallel" axis can feed both v7x TensorCores.
    tb = min(block_b, max(16, _round_up(math.ceil(B / 2), 16)))
    Bp = _round_up(B, tb)

    img = img_feature.astype(jnp.float32)
    cls = class_embed.astype(jnp.float32)
    if Bp != B:
        img = jnp.pad(img, ((0, Bp - B), (0, 0)))
        cls = jnp.pad(cls, ((0, Bp - B), (0, 0)))

    nb, nh = Bp // tb, H // th
    grid = (nb, nh)

    # VMEM budget: double-buffered streamed blocks + un-modelled intermediates.
    est = (2 * tb * (F_dim + C_dim) * 4            # f32 activation tiles (x2 buf)
           + 2 * (F_dim + C_dim) * th * wbpe       # bf16 fc1 weight slabs (x2 buf)
           + 2 * 2 * th * 4                        # b1 / w2 slabs (f32, x2 buf)
           + 2 * tb * OUT_LANES * 4                # output tiles (x2 buf)
           + tb * th * 4                           # f32 h intermediate
           + tb * (F_dim + C_dim) * wbpe           # in-kernel bf16 casts
           + tb * 4)                               # accumulator
    try:
        cap = int(0.85 * pltpu.get_tpu_info().vmem_capacity_bytes)
    except Exception:
        cap = 48 << 20                             # conservative (v7x: 64 MiB/TC)
    vmem_limit = int(min(max(2 * est, 32 << 20), cap))

    cost = pl.CostEstimate(
        flops=int(2 * Bp * (F_dim + C_dim) * H + 2 * Bp * H),
        transcendentals=0,
        bytes_accessed=int(Bp * (F_dim + C_dim) * 4
                           + nb * ((F_dim + C_dim) * H * wbpe + 2 * H * 4)
                           + Bp * OUT_LANES * 4),
    )

    out = pl.pallas_call(
        _discriminator_kernel,
        out_shape=jax.ShapeDtypeStruct((Bp, OUT_LANES), jnp.float32),
        grid_spec=pltpu.PrefetchScalarGridSpec(
            num_scalar_prefetch=0,
            grid=grid,
            in_specs=[
                # batch-tiled activations (re-fetched only when i changes)
                pl.BlockSpec((tb, F_dim), lambda i, j: (i, 0)),
                pl.BlockSpec((tb, C_dim), lambda i, j: (i, 0)),
                # H-streamed weight/bias slabs (default 2-deep buffering
                # hides the weight DMA under the previous slab's MXU work)
                pl.BlockSpec((F_dim, th), lambda i, j: (0, j)),
                pl.BlockSpec((C_dim, th), lambda i, j: (0, j)),
                pl.BlockSpec((1, th), lambda i, j: (0, j)),
                pl.BlockSpec((1, th), lambda i, j: (0, j)),
                # scalar fc2 bias lives in SMEM
                pl.BlockSpec(memory_space=pltpu.MemorySpace.SMEM),
            ],
            out_specs=pl.BlockSpec((tb, OUT_LANES), lambda i, j: (i, 0)),
            scratch_shapes=[pltpu.VMEM((tb, 1), jnp.float32)],
        ),
        compiler_params=pltpu.CompilerParams(
            dimension_semantics=("parallel", "arbitrary"),
            vmem_limit_bytes=vmem_limit,
        ),
        cost_estimate=cost,
    )(img, cls, w1a, w1b, b1, w2, b2)

    # Slice back the real logit column and the un-padded batch rows.
    return out[:B, 0:1]


def init_params(key, feature_dim, class_dim, hidden_size):
    """Synthetic init mimicking nn.Linear's U(-1/sqrt(fan_in), +); bf16 fc1."""
    k1, k2, k3, k4, k5 = jax.random.split(key, 5)
    in1 = feature_dim + class_dim
    bound1 = 1.0 / jnp.sqrt(in1)
    bound2 = 1.0 / jnp.sqrt(hidden_size)
    w1a = jax.random.uniform(k1, (feature_dim, hidden_size), jnp.float32,
                             -bound1, bound1).astype(jnp.bfloat16)
    w1b = jax.random.uniform(k2, (class_dim, hidden_size), jnp.float32,
                             -bound1, bound1).astype(jnp.bfloat16)
    b1 = jax.random.uniform(k3, (1, hidden_size), jnp.float32, -bound1, bound1)
    # fc2 weight kept as a tiny f32 row vector (1, H); no zero-padded slab.
    w2 = jax.random.uniform(k4, (1, hidden_size), jnp.float32, -bound2, bound2)
    b2 = jax.random.uniform(k5, (1,), jnp.float32, -bound2, bound2)
    return {"w1a": w1a, "w1b": w1b, "b1": b1, "w2": w2, "b2": b2}


def reference_forward(img_feature, class_embed, params):
    """Pure-JAX reference doing the same bf16-fc1 / f32-fc2 math."""
    dt = params["w1a"].dtype
    x = jnp.concatenate([img_feature, class_embed], axis=-1).astype(dt)
    w1 = jnp.concatenate([params["w1a"], params["w1b"]], axis=0)
    h = jnp.dot(x, w1, preferred_element_type=jnp.float32) + params["b1"]
    h = jnp.maximum(h, 0.2 * h)
    v = jnp.sum(h * params["w2"], axis=-1, keepdims=True) + params["b2"][0]
    return v


if __name__ == "__main__":
    # Small, TPU-tile-friendly shapes (real model: feature_dim=2048, hidden=4096).
    BATCH = 32
    FEATURE_DIM = 256
    CLASS_DIM = 128
    HIDDEN = 1024      # two 512-wide H slabs -> exercises the streamed reduction

    key = jax.random.PRNGKey(0)
    k_img, k_cls, k_params = jax.random.split(key, 3)

    img_feature = jax.random.normal(k_img, (BATCH, FEATURE_DIM), jnp.float32)
    class_embed = jax.random.normal(k_cls, (BATCH, CLASS_DIM), jnp.float32)
    params = init_params(k_params, FEATURE_DIM, CLASS_DIM, HIDDEN)

    fwd = jax.jit(lambda a, b: discriminator_forward(a, b, params))
    validity = jax.block_until_ready(fwd(img_feature, class_embed))

    ref = reference_forward(img_feature, class_embed, params)
    assert validity.shape == (BATCH, 1)
    # bf16 fc1 weights -> compare against the matching bf16 reference.
    assert jnp.allclose(validity, ref, atol=2e-2, rtol=2e-2), "mismatch vs reference"

    print("KERNEL_OK")
</pallas_src>

<mosaic_0001>
module attributes {stable_mosaic.version = 11 : i64} {
  func.func @_discriminator_kernel(%arg0: i32, %arg1: i32, %arg2: memref<16x256xf32, #tpu.memory_space<vmem>>, %arg3: memref<16x128xf32, #tpu.memory_space<vmem>>, %arg4: memref<256x512xbf16, #tpu.memory_space<vmem>>, %arg5: memref<128x512xbf16, #tpu.memory_space<vmem>>, %arg6: memref<1x512xf32, #tpu.memory_space<vmem>>, %arg7: memref<1x512xf32, #tpu.memory_space<vmem>>, %arg8: memref<1xf32, #tpu.memory_space<smem>>, %arg9: memref<16x128xf32, #tpu.memory_space<vmem>>, %arg10: memref<16x1xf32, #tpu.memory_space<vmem>>) attributes {dimension_semantics = [#tpu.dimension_semantics<parallel>, #tpu.dimension_semantics<arbitrary>], iteration_bounds = array<i64: 2, 2>, scalar_prefetch = 0 : i64, scratch_operands = 1 : i64, tpu.core_type = #tpu.core_type<tc>, window_params = [{transform_indices = @transform_0, window_bounds = array<i64: 16, 256>}, {transform_indices = @transform_1, window_bounds = array<i64: 16, 128>}, {transform_indices = @transform_2, window_bounds = array<i64: 256, 512>}, {transform_indices = @transform_3, window_bounds = array<i64: 128, 512>}, {transform_indices = @transform_4, window_bounds = array<i64: 1, 512>}, {transform_indices = @transform_5, window_bounds = array<i64: 1, 512>}, {transform_indices = @transform_6, window_bounds = array<i64: 1>}, {transform_indices = @transform_7, window_bounds = array<i64: 16, 128>}]} {
    %c0_i32 = arith.constant 0 : i32
    %0 = arith.cmpi eq, %arg1, %c0_i32 : i32
    %1 = arith.extui %0 : i1 to i32
    %c0_i32_0 = arith.constant 0 : i32
    %2 = arith.cmpi ne, %1, %c0_i32_0 : i32
    scf.if %2 {
      %cst_20 = arith.constant 0.000000e+00 : f32
      %29 = vector.broadcast %cst_20 : f32 to vector<16x1xf32>
      %c0_21 = arith.constant 0 : index
      %c0_22 = arith.constant 0 : index
      %30 = vector.load %arg10[%c0_21, %c0_22] : memref<16x1xf32, #tpu.memory_space<vmem>>, vector<16x1xf32>
      tpu.vector_store %arg10[%c0_21, %c0_22], %29 {strides = array<i32>} : memref<16x1xf32, #tpu.memory_space<vmem>>, vector<16x1xf32>,
    } else {
    }
    %c0 = arith.constant 0 : index
    %c0_1 = arith.constant 0 : index
    %3 = vector.load %arg2[%c0, %c0_1] : memref<16x256xf32, #tpu.memory_space<vmem>>, vector<16x256xf32>
    %4 = arith.truncf %3 : vector<16x256xf32> to vector<16x256xbf16>
    %c0_2 = arith.constant 0 : index
    %c0_3 = arith.constant 0 : index
    %5 = vector.load %arg3[%c0_2, %c0_3] : memref<16x128xf32, #tpu.memory_space<vmem>>, vector<16x128xf32>
    %6 = arith.truncf %5 : vector<16x128xf32> to vector<16x128xbf16>
    %c0_4 = arith.constant 0 : index
    %c0_5 = arith.constant 0 : index
    %7 = vector.load %arg4[%c0_4, %c0_5] : memref<256x512xbf16, #tpu.memory_space<vmem>>, vector<256x512xbf16>
    %cst = arith.constant dense<0.000000e+00> : vector<16x512xf32>
    %8 = tpu.matmul %4, %7, %cst {dimension_numbers = #tpu.dot_dimension_numbers<[1], [0], [0], [1], [0, 0, 1, 1], [], []>} : vector<16x256xbf16>, vector<256x512xbf16>, vector<16x512xf32> -> vector<16x512xf32>
    %c0_6 = arith.constant 0 : index
    %c0_7 = arith.constant 0 : index
    %9 = vector.load %arg5[%c0_6, %c0_7] : memref<128x512xbf16, #tpu.memory_space<vmem>>, vector<128x512xbf16>
    %cst_8 = arith.constant dense<0.000000e+00> : vector<16x512xf32>
    %10 = tpu.matmul %6, %9, %cst_8 {dimension_numbers = #tpu.dot_dimension_numbers<[1], [0], [0], [1], [0, 0, 1, 1], [], []>} : vector<16x128xbf16>, vector<128x512xbf16>, vector<16x512xf32> -> vector<16x512xf32>
    %11 = arith.addf %8, %10 : vector<16x512xf32>
    %c0_9 = arith.constant 0 : index
    %c0_10 = arith.constant 0 : index
    %12 = vector.load %arg6[%c0_9, %c0_10] : memref<1x512xf32, #tpu.memory_space<vmem>>, vector<1x512xf32>
    %13 = vector.broadcast %12 : vector<1x512xf32> to vector<16x512xf32>
    %14 = arith.addf %11, %13 : vector<16x512xf32>
    %cst_11 = arith.constant 2.000000e-01 : f32
    %15 = vector.broadcast %cst_11 : f32 to vector<16x512xf32>
    %16 = arith.mulf %15, %14 : vector<16x512xf32>
    %17 = arith.maximumf %14, %16 : vector<16x512xf32>
    %c0_12 = arith.constant 0 : index
    %c0_13 = arith.constant 0 : index
    %18 = vector.load %arg10[%c0_12, %c0_13] : memref<16x1xf32, #tpu.memory_space<vmem>>, vector<16x1xf32>
    %c0_14 = arith.constant 0 : index
    %c0_15 = arith.constant 0 : index
    %19 = vector.load %arg7[%c0_14, %c0_15] : memref<1x512xf32, #tpu.memory_space<vmem>>, vector<1x512xf32>
    %20 = vector.broadcast %19 : vector<1x512xf32> to vector<16x512xf32>
    %21 = arith.mulf %17, %20 : vector<16x512xf32>
    %cst_16 = arith.constant dense<0.000000e+00> : vector<16xf32>
    %22 = vector.multi_reduction <add>, %21, %cst_16 [1] : vector<16x512xf32> to vector<16xf32>
    %23 = vector.shape_cast %22 : vector<16xf32> to vector<16x1xf32>
    %24 = arith.addf %18, %23 : vector<16x1xf32>
    %c0_17 = arith.constant 0 : index
    %c0_18 = arith.constant 0 : index
    %25 = vector.load %arg10[%c0_17, %c0_18] : memref<16x1xf32, #tpu.memory_space<vmem>>, vector<16x1xf32>
    tpu.vector_store %arg10[%c0_17, %c0_18], %24 {strides = array<i32>} : memref<16x1xf32, #tpu.memory_space<vmem>>, vector<16x1xf32>,
    %c1_i32 = arith.constant 1 : i32
    %26 = arith.cmpi eq, %arg1, %c1_i32 : i32
    %27 = arith.extui %26 : i1 to i32
    %c0_i32_19 = arith.constant 0 : i32
    %28 = arith.cmpi ne, %27, %c0_i32_19 : i32
    scf.if %28 {
      %c0_20 = arith.constant 0 : index
      %c0_21 = arith.constant 0 : index
      %29 = vector.load %arg10[%c0_20, %c0_21] : memref<16x1xf32, #tpu.memory_space<vmem>>, vector<16x1xf32>
      %c0_22 = arith.constant 0 : index
      %30 = memref.load %arg8[%c0_22] : memref<1xf32, #tpu.memory_space<smem>>
      %31 = vector.broadcast %30 : f32 to vector<16x1xf32>
      %32 = arith.addf %29, %31 : vector<16x1xf32>
      %33 = vector.shape_cast %32 : vector<16x1xf32> to vector<16x1xf32>
      %34 = vector.broadcast %33 : vector<16x1xf32> to vector<16x128xf32>
      %c0_23 = arith.constant 0 : index
      %c0_24 = arith.constant 0 : index
      %35 = vector.load %arg9[%c0_23, %c0_24] : memref<16x128xf32, #tpu.memory_space<vmem>>, vector<16x128xf32>
      tpu.vector_store %arg9[%c0_23, %c0_24], %34 {strides = array<i32>} : memref<16x128xf32, #tpu.memory_space<vmem>>, vector<16x128xf32>,
    } else {
    }
    return
  }
  func.func @transform_0(%arg0: i32, %arg1: i32) -> (i32, i32) {
    %c0_i32 = arith.constant 0 : i32
    %c0_i32_0 = arith.constant 0 : i32
    return %arg0, %c0_i32 : i32, i32
  }
  func.func @transform_1(%arg0: i32, %arg1: i32) -> (i32, i32) {
    %c0_i32 = arith.constant 0 : i32
    %c0_i32_0 = arith.constant 0 : i32
    return %arg0, %c0_i32 : i32, i32
  }
  func.func @transform_2(%arg0: i32, %arg1: i32) -> (i32, i32) {
    %c0_i32 = arith.constant 0 : i32
    %c0_i32_0 = arith.constant 0 : i32
    return %c0_i32, %arg1 : i32, i32
  }
  func.func @transform_3(%arg0: i32, %arg1: i32) -> (i32, i32) {
    %c0_i32 = arith.constant 0 : i32
    %c0_i32_0 = arith.constant 0 : i32
    return %c0_i32, %arg1 : i32, i32
  }
  func.func @transform_4(%arg0: i32, %arg1: i32) -> (i32, i32) {
    %c0_i32 = arith.constant 0 : i32
    %c0_i32_0 = arith.constant 0 : i32
    return %c0_i32, %arg1 : i32, i32
  }
  func.func @transform_5(%arg0: i32, %arg1: i32) -> (i32, i32) {
    %c0_i32 = arith.constant 0 : i32
    %c0_i32_0 = arith.constant 0 : i32
    return %c0_i32, %arg1 : i32, i32
  }
  func.func @transform_6(%arg0: i32, %arg1: i32) -> i32 {
    %c0_i32 = arith.constant 0 : i32
    %c0_i32_0 = arith.constant 0 : i32
    return %c0_i32 : i32
  }
  func.func @transform_7(%arg0: i32, %arg1: i32) -> (i32, i32) {
    %c0_i32 = arith.constant 0 : i32
    %c0_i32_0 = arith.constant 0 : i32
    return %arg0, %c0_i32 : i32, i32
  }
}

</mosaic_0001>

<bundles_post_ra>
// kernel: _lambda_.1
= control target key start
LH: loop header
LB: loop body
LE: loop exit
PB: predicated region body
PF: predicated region fallthrough
CT: control target
= control target key end

     0   :  { %s2522_s0 = inlined_call_operand.vmem [shape: f32[32,256], index: 0, kind: input, shape index: {}]   ;;  %s2523_s1 = inlined_call_operand.vmem [shape: f32[32,128], index: 1, kind: input, shape index: {}]   ;;  %s2524_s2 = inlined_call_operand.vmem [shape: bf16[256,1024], index: 2, kind: input, shape index: {}]   ;;  %s2525_s3 = inlined_call_operand.vmem [shape: bf16[128,1024], index: 3, kind: input, shape index: {}]   ;;  %s2526_s4 = inlined_call_operand.vmem [shape: f32[1,1024], index: 4, kind: input, shape index: {}]   ;;  %s2527_s5 = inlined_call_operand.vmem [shape: f32[1,1024], index: 5, kind: input, shape index: {}]   ;;  %s2528_s6 = inlined_call_operand.<no memory space> [shape: f32[1], index: 6, kind: input, shape index: {}]   ;;  %s2529_s7 = inlined_call_operand.vmem [shape: f32[32,128], index: 7, kind: output, shape index: {}]  }
   0x1   :  { %2531 = sst [smem:[#allocation8_spill]] %s2524_s2 }
   0x2   :  { %2532 = sst [smem:[#allocation9_spill]] %s2525_s3 }
   0x3   :  { %12 = sst [smem:[#allocation3]] %s2528_s6 }
   0x4   :  { %s2081_s26 = smov 0   ;;  %s2083_s27 = smov 0  }
   0x5   :  { %s2085_s28 = smov 0   ;;  %s2087_s29 = smov 0  }
   0x6   :  { %s2089_s30 = smov 0   ;;  %s2091_s8 = smov 0  }
   0x7   :  { %s2093_s9 = smov 0  }
   0x8 LB: > { %s27_s6 = sadd.s32 1, %s2025_s30  ;;  %s30_s10 = sadd.s32 1, %s2029_s8  ;;  %s2033_s9 = sphi %s2093_s9, %s18_s9   ;;  %s2029_s8 = sphi %s2091_s8, %s2545_s8   ;;  %s2025_s30 = sphi %s2089_s30, %s2544_s30   ;;  %s2021_s29 = sphi %s2087_s29, %s2543_s29   ;;  %s2017_s28 = sphi %s2085_s28, %s2542_s28   ;;  %s2013_s27 = sphi %s2083_s27, %s2541_s27   ;;  %s2009_s26 = sphi %s2081_s26, %s2540_s26  }
   0x9   : > { %p28_p0 = scmp.ge.s32.totalorder %s27_s6, 2  ;;  %s89_s11 = sadd.s32 1, %s2013_s27 }
   0xa   : > { %p96_p1 = scmp.ne.s32.totalorder %s2013_s27, %s2009_s26  ;;  %p97_p2 = scmp.eq.s32.totalorder %s2033_s9, 0 }
   0xb   : > { %s2547_s6 = smov (%p28_p0, %s27_s6), 0  ;;  %s2549_s10 = smov (!%p28_p0, %s30_s10), %s2029_s8 }
   0xc   : > { %2533 = sst [smem:[#allocation6_spill]] %s2547_s6  ;;  %s86_s12 = ssub.s32 %s2025_s30, %s2547_s6 }
   0xd   : > { %p2127_p3 = por %p97_p2, %p96_p1  ;;  %p32_p4 = scmp.ge.s32.totalorder %s2549_s10, 2 }
   0xe   : > { %p87_p5 = scmp.eq.s32.totalorder %s86_s12, 0  ;;  %p1645_p6 = scmp.ge.s32.totalorder %s2033_s9, 4 }
   0xf   : > { %s2551_s10 = smov (%p32_p4, %s2549_s10), 0 }
  0x10   : > { %2535 = sst [smem:[#allocation7_spill]] %s2551_s10  ;;  %250 = sbr.rel (%p1645_p6) target bundleno = 91 (0x5b), region = 20 }
  0x11   : > { %s2134_s14 = scalar_select %p87_p5, %s2013_s27, %s89_s11  }
  0x17   : > { %272 = sbr.rel (!%p2127_p3) target bundleno = 65 (0x41), region = 32  ;;  %s274_s15 = sand.u32 (%p2127_p3), 1, %s2013_s27  }
  0x18   : > { %s1764_s16 = sshll.u32 (%p2127_p3), %s2025_s30, 4  ;;  %s1646_s17 = sshll.u32 (%p2127_p3), %s274_s15, 9 }
  0x19   : > { %s2536_s2 = sld [smem:[#allocation8_spill]] (%p2127_p3)  ;;  %s2149_s21 = scalar_lea.vmem (%p2127_p3), [#allocation4], %s1646_s17 }
  0x1f   : > { %s2144_s20 = scalar_lea.vmem %s2536_s2, %s1764_s16 }
  0x20   : > { %v292_v0 = vld [vmem:[%s2144_s20] sm:$0xff]  ;;  %v294_v1 = vld [vmem:[%s2144_s20 + $0x8] sm:$0xff] }
  0x21   : > { %v296_v2 = vld [vmem:[%s2144_s20 + $0x20] sm:$0xff]  ;;  %293 = vst [vmem:[%s2149_s21] sm:$0xff] %v292_v0  ;;  %295 = vst [vmem:[%s2149_s21 + $0x8] sm:$0xff] %v294_v1  ;;  %v298_v3 = vld [vmem:[%s2144_s20 + $0x28] sm:$0xff] }
  0x22   : > { %297 = vst [vmem:[%s2149_s21 + $0x10] sm:$0xff] %v296_v2  ;;  %v300_v4 = vld [vmem:[%s2144_s20 + $0x40] sm:$0xff]  ;;  %v302_v5 = vld [vmem:[%s2144_s20 + $0x48] sm:$0xff]  ;;  %299 = vst [vmem:[%s2149_s21 + $0x18] sm:$0xff] %v298_v3 }
  0x23   : > { %301 = vst [vmem:[%s2149_s21 + $0x20] sm:$0xff] %v300_v4  ;;  %303 = vst [vmem:[%s2149_s21 + $0x28] sm:$0xff] %v302_v5  ;;  %v304_v6 = vld [vmem:[%s2144_s20 + $0x60] sm:$0xff]  ;;  %v306_v7 = vld [vmem:[%s2144_s20 + $0x68] sm:$0xff] }
  0x24   : > { %v308_v8 = vld [vmem:[%s2144_s20 + $0x80] sm:$0xff]  ;;  %305 = vst [vmem:[%s2149_s21 + $0x30] sm:$0xff] %v304_v6  ;;  %307 = vst [vmem:[%s2149_s21 + $0x38] sm:$0xff] %v306_v7  ;;  %v310_v9 = vld [vmem:[%s2144_s20 + $0x88] sm:$0xff] }
  0x25   : > { %309 = vst [vmem:[%s2149_s21 + $0x40] sm:$0xff] %v308_v8  ;;  %v312_v10 = vld [vmem:[%s2144_s20 + $0xa0] sm:$0xff]  ;;  %v314_v11 = vld [vmem:[%s2144_s20 + $0xa8] sm:$0xff]  ;;  %311 = vst [vmem:[%s2149_s21 + $0x48] sm:$0xff] %v310_v9 }
  0x26   : > { %313 = vst [vmem:[%s2149_s21 + $0x50] sm:$0xff] %v312_v10  ;;  %315 = vst [vmem:[%s2149_s21 + $0x58] sm:$0xff] %v314_v11  ;;  %v316_v12 = vld [vmem:[%s2144_s20 + $0xc0] sm:$0xff]  ;;  %v318_v13 = vld [vmem:[%s2144_s20 + $0xc8] sm:$0xff] }
  0x27   : > { %v320_v14 = vld [vmem:[%s2144_s20 + $0xe0] sm:$0xff]  ;;  %317 = vst [vmem:[%s2149_s21 + $0x60] sm:$0xff] %v316_v12  ;;  %319 = vst [vmem:[%s2149_s21 + $0x68] sm:$0xff] %v318_v13  ;;  %v322_v15 = vld [vmem:[%s2144_s20 + $0xe8] sm:$0xff] }
  0x28   : > { %321 = vst [vmem:[%s2149_s21 + $0x70] sm:$0xff] %v320_v14  ;;  %v324_v16 = vld [vmem:[%s2144_s20 + $0x100] sm:$0xff]  ;;  %v326_v17 = vld [vmem:[%s2144_s20 + $0x108] sm:$0xff]  ;;  %323 = vst [vmem:[%s2149_s21 + $0x78] sm:$0xff] %v322_v15 }
  0x29   : > { %325 = vst [vmem:[%s2149_s21 + $0x80] sm:$0xff] %v324_v16  ;;  %327 = vst [vmem:[%s2149_s21 + $0x88] sm:$0xff] %v326_v17  ;;  %v328_v18 = vld [vmem:[%s2144_s20 + $0x120] sm:$0xff]  ;;  %v330_v19 = vld [vmem:[%s2144_s20 + $0x128] sm:$0xff] }
  0x2a   : > { %v332_v20 = vld [vmem:[%s2144_s20 + $0x140] sm:$0xff]  ;;  %329 = vst [vmem:[%s2149_s21 + $0x90] sm:$0xff] %v328_v18  ;;  %331 = vst [vmem:[%s2149_s21 + $0x98] sm:$0xff] %v330_v19  ;;  %v334_v21 = vld [vmem:[%s2144_s20 + $0x148] sm:$0xff] }
  0x2b   : > { %333 = vst [vmem:[%s2149_s21 + $0xa0] sm:$0xff] %v332_v20  ;;  %v336_v22 = vld [vmem:[%s2144_s20 + $0x160] sm:$0xff]  ;;  %v338_v23 = vld [vmem:[%s2144_s20 + $0x168] sm:$0xff]  ;;  %335 = vst [vmem:[%s2149_s21 + $0xa8] sm:$0xff] %v334_v21 }
  0x2c   : > { %337 = vst [vmem:[%s2149_s21 + $0xb0] sm:$0xff] %v336_v22  ;;  %339 = vst [vmem:[%s2149_s21 + $0xb8] sm:$0xff] %v338_v23  ;;  %v340_v24 = vld [vmem:[%s2144_s20 + $0x180] sm:$0xff]  ;;  %v342_v25 = vld [vmem:[%s2144_s20 + $0x188] sm:$0xff] }
  0x2d   : > { %v344_v26 = vld [vmem:[%s2144_s20 + $0x1a0] sm:$0xff]  ;;  %341 = vst [vmem:[%s2149_s21 + $0xc0] sm:$0xff] %v340_v24  ;;  %343 = vst [vmem:[%s2149_s21 + $0xc8] sm:$0xff] %v342_v25  ;;  %v346_v27 = vld [vmem:[%s2144_s20 + $0x1a8] sm:$0xff] }
  0x2e   : > { %345 = vst [vmem:[%s2149_s21 + $0xd0] sm:$0xff] %v344_v26  ;;  %v348_v28 = vld [vmem:[%s2144_s20 + $0x1c0] sm:$0xff]  ;;  %v350_v29 = vld [vmem:[%s2144_s20 + $0x1c8] sm:$0xff]  ;;  %347 = vst [vmem:[%s2149_s21 + $0xd8] sm:$0xff] %v346_v27 }
  0x2f   : > { %349 = vst [vmem:[%s2149_s21 + $0xe0] sm:$0xff] %v348_v28  ;;  %351 = vst [vmem:[%s2149_s21 + $0xe8] sm:$0xff] %v350_v29  ;;  %v352_v30 = vld [vmem:[%s2144_s20 + $0x1e0] sm:$0xff]  ;;  %v354_v31 = vld [vmem:[%s2144_s20 + $0x1e8] sm:$0xff] }
  0x30   : > { %v356_v32 = vld [vmem:[%s2144_s20 + $0x200] sm:$0xff]  ;;  %353 = vst [vmem:[%s2149_s21 + $0xf0] sm:$0xff] %v352_v30  ;;  %355 = vst [vmem:[%s2149_s21 + $0xf8] sm:$0xff] %v354_v31  ;;  %v358_v33 = vld [vmem:[%s2144_s20 + $0x208] sm:$0xff] }
  0x31   : > { %357 = vst [vmem:[%s2149_s21 + $0x100] sm:$0xff] %v356_v32  ;;  %v360_v34 = vld [vmem:[%s2144_s20 + $0x220] sm:$0xff]  ;;  %v362_v35 = vld [vmem:[%s2144_s20 + $0x228] sm:$0xff]  ;;  %359 = vst [vmem:[%s2149_s21 + $0x108] sm:$0xff] %v358_v33 }
  0x32   : > { %361 = vst [vmem:[%s2149_s21 + $0x110] sm:$0xff] %v360_v34  ;;  %363 = vst [vmem:[%s2149_s21 + $0x118] sm:$0xff] %v362_v35  ;;  %v364_v36 = vld [vmem:[%s2144_s20 + $0x240] sm:$0xff]  ;;  %v366_v37 = vld [vmem:[%s2144_s20 + $0x248] sm:$0xff] }
  0x33   : > { %v368_v38 = vld [vmem:[%s2144_s20 + $0x260] sm:$0xff]  ;;  %365 = vst [vmem:[%s2149_s21 + $0x120] sm:$0xff] %v364_v36  ;;  %367 = vst [vmem:[%s2149_s21 + $0x128] sm:$0xff] %v366_v37  ;;  %v370_v39 = vld [vmem:[%s2144_s20 + $0x268] sm:$0xff] }
  0x34   : > { %369 = vst [vmem:[%s2149_s21 + $0x130] sm:$0xff] %v368_v38  ;;  %v372_v40 = vld [vmem:[%s2144_s20 + $0x280] sm:$0xff]  ;;  %v374_v41 = vld [vmem:[%s2144_s20 + $0x288] sm:$0xff]  ;;  %371 = vst [vmem:[%s2149_s21 + $0x138] sm:$0xff] %v370_v39 }
  0x35   : > { %373 = vst [vmem:[%s2149_s21 + $0x140] sm:$0xff] %v372_v40  ;;  %375 = vst [vmem:[%s2149_s21 + $0x148] sm:$0xff] %v374_v41  ;;  %v376_v42 = vld [vmem:[%s2144_s20 + $0x2a0] sm:$0xff]  ;;  %v378_v43 = vld [vmem:[%s2144_s20 + $0x2a8] sm:$0xff] }
  0x36   : > { %v380_v44 = vld [vmem:[%s2144_s20 + $0x2c0] sm:$0xff]  ;;  %377 = vst [vmem:[%s2149_s21 + $0x150] sm:$0xff] %v376_v42  ;;  %379 = vst [vmem:[%s2149_s21 + $0x158] sm:$0xff] %v378_v43  ;;  %v382_v45 = vld [vmem:[%s2144_s20 + $0x2c8] sm:$0xff] }
  0x37   : > { %381 = vst [vmem:[%s2149_s21 + $0x160] sm:$0xff] %v380_v44  ;;  %v384_v46 = vld [vmem:[%s2144_s20 + $0x2e0] sm:$0xff]  ;;  %v386_v47 = vld [vmem:[%s2144_s20 + $0x2e8] sm:$0xff]  ;;  %383 = vst [vmem:[%s2149_s21 + $0x168] sm:$0xff] %v382_v45 }
  0x38   : > { %385 = vst [vmem:[%s2149_s21 + $0x170] sm:$0xff] %v384_v46  ;;  %387 = vst [vmem:[%s2149_s21 + $0x178] sm:$0xff] %v386_v47  ;;  %v388_v48 = vld [vmem:[%s2144_s20 + $0x300] sm:$0xff]  ;;  %v390_v49 = vld [vmem:[%s2144_s20 + $0x308] sm:$0xff] }
  0x39   : > { %v392_v50 = vld [vmem:[%s2144_s20 + $0x320] sm:$0xff]  ;;  %389 = vst [vmem:[%s2149_s21 + $0x180] sm:$0xff] %v388_v48  ;;  %391 = vst [vmem:[%s2149_s21 + $0x188] sm:$0xff] %v390_v49  ;;  %v394_v51 = vld [vmem:[%s2144_s20 + $0x328] sm:$0xff] }
  0x3a   : > { %393 = vst [vmem:[%s2149_s21 + $0x190] sm:$0xff] %v392_v50  ;;  %v396_v52 = vld [vmem:[%s2144_s20 + $0x340] sm:$0xff]  ;;  %v398_v53 = vld [vmem:[%s2144_s20 + $0x348] sm:$0xff]  ;;  %395 = vst [vmem:[%s2149_s21 + $0x198] sm:$0xff] %v394_v51 }
  0x3b   : > { %397 = vst [vmem:[%s2149_s21 + $0x1a0] sm:$0xff] %v396_v52  ;;  %399 = vst [vmem:[%s2149_s21 + $0x1a8] sm:$0xff] %v398_v53  ;;  %v400_v54 = vld [vmem:[%s2144_s20 + $0x360] sm:$0xff]  ;;  %v402_v55 = vld [vmem:[%s2144_s20 + $0x368] sm:$0xff] }
  0x3c   : > { %v404_v56 = vld [vmem:[%s2144_s20 + $0x380] sm:$0xff]  ;;  %401 = vst [vmem:[%s2149_s21 + $0x1b0] sm:$0xff] %v400_v54  ;;  %403 = vst [vmem:[%s2149_s21 + $0x1b8] sm:$0xff] %v402_v55  ;;  %v406_v57 = vld [vmem:[%s2144_s20 + $0x388] sm:$0xff] }
  0x3d   : > { %405 = vst [vmem:[%s2149_s21 + $0x1c0] sm:$0xff] %v404_v56  ;;  %v408_v58 = vld [vmem:[%s2144_s20 + $0x3a0] sm:$0xff]  ;;  %v410_v59 = vld [vmem:[%s2144_s20 + $0x3a8] sm:$0xff]  ;;  %407 = vst [vmem:[%s2149_s21 + $0x1c8] sm:$0xff] %v406_v57 }
  0x3e   : > { %409 = vst [vmem:[%s2149_s21 + $0x1d0] sm:$0xff] %v408_v58  ;;  %411 = vst [vmem:[%s2149_s21 + $0x1d8] sm:$0xff] %v410_v59  ;;  %v412_v60 = vld [vmem:[%s2144_s20 + $0x3c0] sm:$0xff]  ;;  %v414_v61 = vld [vmem:[%s2144_s20 + $0x3c8] sm:$0xff] }
  0x3f   : > { %v416_v62 = vld [vmem:[%s2144_s20 + $0x3e0] sm:$0xff]  ;;  %413 = vst [vmem:[%s2149_s21 + $0x1e0] sm:$0xff] %v412_v60  ;;  %415 = vst [vmem:[%s2149_s21 + $0x1e8] sm:$0xff] %v414_v61  ;;  %v418_v63 = vld [vmem:[%s2144_s20 + $0x3e8] sm:$0xff] }
  0x40   : > { %417 = vst [vmem:[%s2149_s21 + $0x1f0] sm:$0xff] %v416_v62  ;;  %419 = vst [vmem:[%s2149_s21 + $0x1f8] sm:$0xff] %v418_v63 }
  0x41 PF: > { %425 = sbr.rel (!%p2127_p3) target bundleno = 91 (0x5b), region = 55  ;;  %s427_s22 = sand.u32 (%p2127_p3), 1, %s2013_s27  }
  0x42   : > { %s1765_s23 = sshll.u32 (%p2127_p3), %s2025_s30, 4  ;;  %s1649_s24 = sshll.u32 (%p2127_p3), %s427_s22, 8 }
  0x43   : > { %s2537_s3 = sld [smem:[#allocation9_spill]] (%p2127_p3)  ;;  %s2288_s13 = scalar_lea.vmem (%p2127_p3), [#allocation5], %s1649_s24 }
  0x49   : > { %s2283_s12 = scalar_lea.vmem %s2537_s3, %s1765_s23 }
  0x4a   : > { %v445_v0 = vld [vmem:[%s2283_s12] sm:$0xff]  ;;  %v447_v1 = vld [vmem:[%s2283_s12 + $0x8] sm:$0xff] }
  0x4b   : > { %v449_v2 = vld [vmem:[%s2283_s12 + $0x20] sm:$0xff]  ;;  %446 = vst [vmem:[%s2288_s13] sm:$0xff] %v445_v0  ;;  %448 = vst [vmem:[%s2288_s13 + $0x8] sm:$0xff] %v447_v1  ;;  %v451_v3 = vld [vmem:[%s2283_s12 + $0x28] sm:$0xff] }
  0x4c   : > { %450 = vst [vmem:[%s2288_s13 + $0x10] sm:$0xff] %v449_v2  ;;  %v453_v4 = vld [vmem:[%s2283_s12 + $0x40] sm:$0xff]  ;;  %v455_v5 = vld [vmem:[%s2283_s12 + $0x48] sm:$0xff]  ;;  %452 = vst [vmem:[%s2288_s13 + $0x18] sm:$0xff] %v451_v3 }
  0x4d   : > { %454 = vst [vmem:[%s2288_s13 + $0x20] sm:$0xff] %v453_v4  ;;  %456 = vst [vmem:[%s2288_s13 + $0x28] sm:$0xff] %v455_v5  ;;  %v457_v6 = vld [vmem:[%s2283_s12 + $0x60] sm:$0xff]  ;;  %v459_v7 = vld [vmem:[%s2283_s12 + $0x68] sm:$0xff] }
  0x4e   : > { %v461_v8 = vld [vmem:[%s2283_s12 + $0x80] sm:$0xff]  ;;  %458 = vst [vmem:[%s2288_s13 + $0x30] sm:$0xff] %v457_v6  ;;  %460 = vst [vmem:[%s2288_s13 + $0x38] sm:$0xff] %v459_v7  ;;  %v463_v9 = vld [vmem:[%s2283_s12 + $0x88] sm:$0xff] }
  0x4f   : > { %462 = vst [vmem:[%s2288_s13 + $0x40] sm:$0xff] %v461_v8  ;;  %v465_v10 = vld [vmem:[%s2283_s12 + $0xa0] sm:$0xff]  ;;  %v467_v11 = vld [vmem:[%s2283_s12 + $0xa8] sm:$0xff]  ;;  %464 = vst [vmem:[%s2288_s13 + $0x48] sm:$0xff] %v463_v9 }
  0x50   : > { %466 = vst [vmem:[%s2288_s13 + $0x50] sm:$0xff] %v465_v10  ;;  %468 = vst [vmem:[%s2288_s13 + $0x58] sm:$0xff] %v467_v11  ;;  %v469_v12 = vld [vmem:[%s2283_s12 + $0xc0] sm:$0xff]  ;;  %v471_v13 = vld [vmem:[%s2283_s12 + $0xc8] sm:$0xff] }
  0x51   : > { %v473_v14 = vld [vmem:[%s2283_s12 + $0xe0] sm:$0xff]  ;;  %470 = vst [vmem:[%s2288_s13 + $0x60] sm:$0xff] %v469_v12  ;;  %472 = vst [vmem:[%s2288_s13 + $0x68] sm:$0xff] %v471_v13  ;;  %v475_v15 = vld [vmem:[%s2283_s12 + $0xe8] sm:$0xff] }
  0x52   : > { %474 = vst [vmem:[%s2288_s13 + $0x70] sm:$0xff] %v473_v14  ;;  %v477_v16 = vld [vmem:[%s2283_s12 + $0x100] sm:$0xff]  ;;  %v479_v17 = vld [vmem:[%s2283_s12 + $0x108] sm:$0xff]  ;;  %476 = vst [vmem:[%s2288_s13 + $0x78] sm:$0xff] %v475_v15 }
  0x53   : > { %478 = vst [vmem:[%s2288_s13 + $0x80] sm:$0xff] %v477_v16  ;;  %480 = vst [vmem:[%s2288_s13 + $0x88] sm:$0xff] %v479_v17  ;;  %v481_v18 = vld [vmem:[%s2283_s12 + $0x120] sm:$0xff]  ;;  %v483_v19 = vld [vmem:[%s2283_s12 + $0x128] sm:$0xff] }
  0x54   : > { %v485_v20 = vld [vmem:[%s2283_s12 + $0x140] sm:$0xff]  ;;  %482 = vst [vmem:[%s2288_s13 + $0x90] sm:$0xff] %v481_v18  ;;  %484 = vst [vmem:[%s2288_s13 + $0x98] sm:$0xff] %v483_v19  ;;  %v487_v21 = vld [vmem:[%s2283_s12 + $0x148] sm:$0xff] }
  0x55   : > { %486 = vst [vmem:[%s2288_s13 + $0xa0] sm:$0xff] %v485_v20  ;;  %v489_v22 = vld [vmem:[%s2283_s12 + $0x160] sm:$0xff]  ;;  %v491_v23 = vld [vmem:[%s2283_s12 + $0x168] sm:$0xff]  ;;  %488 = vst [vmem:[%s2288_s13 + $0xa8] sm:$0xff] %v487_v21 }
  0x56   : > { %490 = vst [vmem:[%s2288_s13 + $0xb0] sm:$0xff] %v489_v22  ;;  %492 = vst [vmem:[%s2288_s13 + $0xb8] sm:$0xff] %v491_v23  ;;  %v493_v24 = vld [vmem:[%s2283_s12 + $0x180] sm:$0xff]  ;;  %v495_v25 = vld [vmem:[%s2283_s12 + $0x188] sm:$0xff] }
  0x57   : > { %v497_v26 = vld [vmem:[%s2283_s12 + $0x1a0] sm:$0xff]  ;;  %494 = vst [vmem:[%s2288_s13 + $0xc0] sm:$0xff] %v493_v24  ;;  %496 = vst [vmem:[%s2288_s13 + $0xc8] sm:$0xff] %v495_v25  ;;  %v499_v27 = vld [vmem:[%s2283_s12 + $0x1a8] sm:$0xff] }
  0x58   : > { %498 = vst [vmem:[%s2288_s13 + $0xd0] sm:$0xff] %v497_v26  ;;  %v501_v28 = vld [vmem:[%s2283_s12 + $0x1c0] sm:$0xff]  ;;  %v503_v29 = vld [vmem:[%s2283_s12 + $0x1c8] sm:$0xff]  ;;  %500 = vst [vmem:[%s2288_s13 + $0xd8] sm:$0xff] %v499_v27 }
  0x59   : > { %502 = vst [vmem:[%s2288_s13 + $0xe0] sm:$0xff] %v501_v28  ;;  %504 = vst [vmem:[%s2288_s13 + $0xe8] sm:$0xff] %v503_v29  ;;  %v505_v30 = vld [vmem:[%s2283_s12 + $0x1e0] sm:$0xff]  ;;  %v507_v31 = vld [vmem:[%s2283_s12 + $0x1e8] sm:$0xff] }
  0x5a   : > { %506 = vst [vmem:[%s2288_s13 + $0xf0] sm:$0xff] %v505_v30  ;;  %508 = vst [vmem:[%s2288_s13 + $0xf8] sm:$0xff] %v507_v31 }
  0x5b PF: > { %p1652_p7 = scmp.ge.s32.totalorder %s2033_s9, 1  ;;  %p529_p8 = scmp.lt.s32.totalorder %s2033_s9, 5 }
  0x5d   : > { %p530_p9 = pnand %p1652_p7, %p529_p8 }
  0x5e   : > { %s536_s15 = sand.u32 (!%p530_p9), 1, %s2009_s26   ;;  %s1655_s16 = sshll.u32 (!%p530_p9), %s2021_s29, 1 }
  0x5f   : > { %533 = sbr.rel (%p530_p9) target bundleno = 726 (0x2d6), region = 86  ;;  %s1653_s17 = sshll.u32 (!%p530_p9), %s536_s15, 9 }
  0x60   : > { %s1654_s18 = sshll.u32 (!%p530_p9), %s536_s15, 8  ;;  %p598_p10 = scmp.lt.s32.totalorder (!%p530_p9), %s1655_s16, 3 }
  0x61   : > { %s1660_s19 = sshll.u32 (!%p530_p9), %s2017_s28, 2  ;;  %s2383_s22 = scalar_lea.vmem (!%p530_p9), [#allocation5], %s1654_s18 }
  0x62   : > { %p613_p11 = scmp.lt.s32.totalorder (!%p530_p9), %s1660_s19, 7  ;;  %p1664_p12 = scmp.ne.s32.totalorder (!%p530_p9), %s2017_s28, 0 }
  0x66   : > { %s2553_s16 = smov (!%p598_p10, %s1655_s16), 3  ;;  %s2555_s19 = smov (!%p613_p11, %s1660_s19), 7 }
  0x67   : > { %s1766_s20 = sshll.u32 %s2553_s16, 4  ;;  %s1659_s21 = sshll.u32 %s2553_s16, 3  ;;  %vm633_vm0 = vcmask (!%p1664_p12), 7168   ;;  %v2035_v32 = vmov (!%p1664_p12), 0.0  }
  0x68   : > { %s2361_s24 = scalar_lea.vmem %s2522_s0, %s1766_s20  ;;  %s2366_s29 = scalar_lea.vmem %s2523_s1, %s1659_s21  ;;  %634 = vst.msk [vmem:[#allocation2] sm:$0xff] (!%p1664_p12), %vm633_vm0, %v2035_v32  ;;  %635 = vst.msk [vmem:[#allocation2 + $0x8] sm:$0xff] (!%p1664_p12), %vm633_vm0, %v2035_v32 }
  0x69   : > { %s615_s13 = scalar_lea.vmem %s2526_s4, %s2555_s19  ;;  %s620_s3 = scalar_lea.vmem %s2527_s5, %s2555_s19 }
  0x6a   : > { %s2379_s6 = scalar_lea.vmem %s2529_s7, %s1659_s21  ;;  %s2381_s20 = scalar_lea.vmem [#allocation4], %s1653_s17 }
  0x6b   : > { %632 = sbr.rel (%p1664_p12) target bundleno = 114 (0x72), region = 98 }
  0x72 PF: > { %v1834_v33 = vld [vmem:[%s2383_s22 + $0x4] ss:$16 sps:$4 sm:$0xff]   ;;  %v1836_v34 = vld [vmem:[%s2383_s22 + $0xc] ss:$16 sps:$4 sm:$0xff]   ;;  %v2036_v35 = vmov 0   ;;  %vm1483_vm1 = vcmask 7168  }
  0x73   : > { %933 = vmatprep.mubr.bf16.mxu0 %v2036_v35  ;;  %976 = vmatprep.mubr.bf16.mxu1 %v2036_v35  ;;  %v1838_v36 = vld [vmem:[%s2383_s22] ss:$16 sps:$4 sm:$0xff]   ;;  %v1839_v37 = vld [vmem:[%s2383_s22 + $0x8] ss:$16 sps:$4 sm:$0xff]   ;;  %v1840_v38 = vld [vmem:[%s2383_s22 + $0x24] ss:$16 sps:$4 sm:$0xff]  }
  0x74   : > { %901 = vmatprep.subr.bf16.mxu0 %v1834_v33  ;;  %944 = vmatprep.subr.bf16.mxu1 %v1836_v34  ;;  %v1842_v39 = vld [vmem:[%s2383_s22 + $0x2c] ss:$16 sps:$4 sm:$0xff]   ;;  %v1844_v40 = vld [vmem:[%s2383_s22 + $0x20] ss:$16 sps:$4 sm:$0xff]   ;;  %v1845_v41 = vld [vmem:[%s2383_s22 + $0x28] ss:$16 sps:$4 sm:$0xff]  }
  0x75   : > { %902 = vmatpush1.bf16.msra.mxu0 %v1838_v36  ;;  %945 = vmatpush1.bf16.msra.mxu1 %v1839_v37  ;;  %v1846_v42 = vld [vmem:[%s2383_s22 + $0x44] ss:$16 sps:$4 sm:$0xff]   ;;  %v1848_v43 = vld [vmem:[%s2383_s22 + $0x4c] ss:$16 sps:$4 sm:$0xff]   ;;  %v1850_v44 = vld [vmem:[%s2383_s22 + $0x40] ss:$16 sps:$4 sm:$0xff]  }
  0x76   : > { %903 = vmatprep.subr.bf16.mxu0 %v1840_v38  ;;  %946 = vmatprep.subr.bf16.mxu1 %v1842_v39  ;;  %v1851_v45 = vld [vmem:[%s2383_s22 + $0x48] ss:$16 sps:$4 sm:$0xff]   ;;  %v1852_v46 = vld [vmem:[%s2383_s22 + $0x64] ss:$16 sps:$4 sm:$0xff]   ;;  %v1854_v47 = vld [vmem:[%s2383_s22 + $0x6c] ss:$16 sps:$4 sm:$0xff]  }
  0x77   : > { %v1856_v48 = vld [vmem:[%s2383_s22 + $0x60] ss:$16 sps:$4 sm:$0xff]   ;;  %v1857_v49 = vld [vmem:[%s2383_s22 + $0x68] ss:$16 sps:$4 sm:$0xff]   ;;  %v1858_v50 = vld [vmem:[%s2383_s22 + $0x84] ss:$16 sps:$4 sm:$0xff]  }
  0x78   : > { %v1860_v51 = vld [vmem:[%s2383_s22 + $0x8c] ss:$16 sps:$4 sm:$0xff]   ;;  %v1862_v52 = vld [vmem:[%s2383_s22 + $0x80] ss:$16 sps:$4 sm:$0xff]   ;;  %v1863_v53 = vld [vmem:[%s2383_s22 + $0x88] ss:$16 sps:$4 sm:$0xff]  }
  0x79   : > { %904 = vmatpush1.bf16.msra.mxu0 %v1844_v40  ;;  %947 = vmatpush1.bf16.msra.mxu1 %v1845_v41  ;;  %v1864_v54 = vld [vmem:[%s2383_s22 + $0xa4] ss:$16 sps:$4 sm:$0xff]   ;;  %v1866_v55 = vld [vmem:[%s2383_s22 + $0xac] ss:$16 sps:$4 sm:$0xff]   ;;  %v1868_v56 = vld [vmem:[%s2383_s22 + $0xa0] ss:$16 sps:$4 sm:$0xff]  }
  0x7a   : > { %905 = vmatprep.subr.bf16.mxu0 %v1846_v42  ;;  %948 = vmatprep.subr.bf16.mxu1 %v1848_v43  ;;  %v1869_v57 = vld [vmem:[%s2383_s22 + $0xa8] ss:$16 sps:$4 sm:$0xff]   ;;  %v1870_v58 = vld [vmem:[%s2383_s22 + $0xc4] ss:$16 sps:$4 sm:$0xff]   ;;  %v1872_v59 = vld [vmem:[%s2383_s22 + $0xcc] ss:$16 sps:$4 sm:$0xff]  }
  0x7b   : > { %v1874_v60 = vld [vmem:[%s2383_s22 + $0xc0] ss:$16 sps:$4 sm:$0xff]   ;;  %v1875_v61 = vld [vmem:[%s2383_s22 + $0xc8] ss:$16 sps:$4 sm:$0xff]   ;;  %v1876_v62 = vld [vmem:[%s2383_s22 + $0xe4] ss:$16 sps:$4 sm:$0xff]  }
  0x7c   : > { %v1878_v63 = vld [vmem:[%s2383_s22 + $0xec] ss:$16 sps:$4 sm:$0xff]   ;;  %v1880_v0 = vld [vmem:[%s2383_s22 + $0xe0] ss:$16 sps:$4 sm:$0xff]   ;;  %v1881_v1 = vld [vmem:[%s2383_s22 + $0xe8] ss:$16 sps:$4 sm:$0xff]  }
  0x7d   : > { %906 = vmatpush1.bf16.msra.mxu0 %v1850_v44  ;;  %949 = vmatpush1.bf16.msra.mxu1 %v1851_v45  ;;  %v642_v2 = vld [vmem:[%s2366_s29] sm:$0xff]  ;;  %v643_v3 = vld [vmem:[%s2366_s29 + $0x8] sm:$0xff]  ;;  %v639_v44 = vld [vmem:[%s2361_s24 + $0x18] sm:$0xff]  ;;  %p1761_p13 = scmp.ne.s32.totalorder %s2017_s28, 1 }
  0x7e   : > { %907 = vmatprep.subr.bf16.mxu0 %v1852_v46  ;;  %950 = vmatprep.subr.bf16.mxu1 %v1854_v47  ;;  %v1884_v4 = vld [vmem:[%s2381_s20 + $0x4] ss:$16 sps:$4 sm:$0xff]   ;;  %v1887_v5 = vld [vmem:[%s2381_s20 + $0xc] ss:$16 sps:$4 sm:$0xff]   ;;  %v644_v6 = vpack.c.bf16 %v643_v3, %v642_v2  ;;  %v1882_v7 = vld [vmem:[%s2381_s20] ss:$16 sps:$4 sm:$0xff]  }
  0x7f   : > { %v1885_v8 = vld [vmem:[%s2381_s20 + $0x8] ss:$16 sps:$4 sm:$0xff]   ;;  %v1890_v9 = vld [vmem:[%s2381_s20 + $0x24] ss:$16 sps:$4 sm:$0xff]   ;;  %v1893_v10 = vld [vmem:[%s2381_s20 + $0x2c] ss:$16 sps:$4 sm:$0xff]  }
  0x80   : > { %v1888_v11 = vld [vmem:[%s2381_s20 + $0x20] ss:$16 sps:$4 sm:$0xff]   ;;  %v1891_v12 = vld [vmem:[%s2381_s20 + $0x28] ss:$16 sps:$4 sm:$0xff]   ;;  %v1896_v13 = vld [vmem:[%s2381_s20 + $0x44] ss:$16 sps:$4 sm:$0xff]  }
  0x81   : > { %908 = vmatpush1.bf16.msra.mxu0 %v1856_v48  ;;  %951 = vmatpush1.bf16.msra.mxu1 %v1857_v49  ;;  %v1899_v14 = vld [vmem:[%s2381_s20 + $0x4c] ss:$16 sps:$4 sm:$0xff]   ;;  %v1894_v15 = vld [vmem:[%s2381_s20 + $0x40] ss:$16 sps:$4 sm:$0xff]   ;;  %v1897_v16 = vld [vmem:[%s2381_s20 + $0x48] ss:$16 sps:$4 sm:$0xff]  }
  0x82   : > { %909 = vmatprep.subr.bf16.mxu0 %v1858_v50  ;;  %952 = vmatprep.subr.bf16.mxu1 %v1860_v51  ;;  %v1902_v17 = vld [vmem:[%s2381_s20 + $0x64] ss:$16 sps:$4 sm:$0xff]   ;;  %v1905_v18 = vld [vmem:[%s2381_s20 + $0x6c] ss:$16 sps:$4 sm:$0xff]   ;;  %v1900_v19 = vld [vmem:[%s2381_s20 + $0x60] ss:$16 sps:$4 sm:$0xff]  }
  0x83   : > { %v1903_v20 = vld [vmem:[%s2381_s20 + $0x68] ss:$16 sps:$4 sm:$0xff]   ;;  %v1908_v21 = vld [vmem:[%s2381_s20 + $0x84] ss:$16 sps:$4 sm:$0xff]   ;;  %v1911_v22 = vld [vmem:[%s2381_s20 + $0x8c] ss:$16 sps:$4 sm:$0xff]  }
  0x84   : > { %v1906_v23 = vld [vmem:[%s2381_s20 + $0x80] ss:$16 sps:$4 sm:$0xff]   ;;  %v1909_v24 = vld [vmem:[%s2381_s20 + $0x88] ss:$16 sps:$4 sm:$0xff]   ;;  %v1914_v25 = vld [vmem:[%s2381_s20 + $0xa4] ss:$16 sps:$4 sm:$0xff]  }
  0x85   : > { %910 = vmatpush1.bf16.msra.mxu0 %v1862_v52  ;;  %953 = vmatpush1.bf16.msra.mxu1 %v1863_v53  ;;  %v1917_v26 = vld [vmem:[%s2381_s20 + $0xac] ss:$16 sps:$4 sm:$0xff]   ;;  %v1912_v27 = vld [vmem:[%s2381_s20 + $0xa0] ss:$16 sps:$4 sm:$0xff]   ;;  %v1915_v28 = vld [vmem:[%s2381_s20 + $0xa8] ss:$16 sps:$4 sm:$0xff]  }
  0x86   : > { %911 = vmatprep.subr.bf16.mxu0 %v1864_v54  ;;  %954 = vmatprep.subr.bf16.mxu1 %v1866_v55  ;;  %v1920_v29 = vld [vmem:[%s2381_s20 + $0xc4] ss:$16 sps:$4 sm:$0xff]   ;;  %v1923_v30 = vld [vmem:[%s2381_s20 + $0xcc] ss:$16 sps:$4 sm:$0xff]   ;;  %v1918_v31 = vld [vmem:[%s2381_s20 + $0xc0] ss:$16 sps:$4 sm:$0xff]  }
  0x87   : > { %v1921_v32 = vld [vmem:[%s2381_s20 + $0xc8] ss:$16 sps:$4 sm:$0xff]   ;;  %v1926_v33 = vld [vmem:[%s2381_s20 + $0xe4] ss:$16 sps:$4 sm:$0xff]   ;;  %v1929_v34 = vld [vmem:[%s2381_s20 + $0xec] ss:$16 sps:$4 sm:$0xff]  }
  0x88   : > { %v1924_v35 = vld [vmem:[%s2381_s20 + $0xe0] ss:$16 sps:$4 sm:$0xff]   ;;  %v1927_v36 = vld [vmem:[%s2381_s20 + $0xe8] ss:$16 sps:$4 sm:$0xff]   ;;  %v1932_v37 = vld [vmem:[%s2381_s20 + $0x104] ss:$16 sps:$4 sm:$0xff]  }
  0x89   : > { %912 = vmatpush1.bf16.msra.mxu0 %v1868_v56  ;;  %955 = vmatpush1.bf16.msra.mxu1 %v1869_v57  ;;  %v1935_v38 = vld [vmem:[%s2381_s20 + $0x10c] ss:$16 sps:$4 sm:$0xff]   ;;  %v1930_v39 = vld [vmem:[%s2381_s20 + $0x100] ss:$16 sps:$4 sm:$0xff]   ;;  %v1933_v40 = vld [vmem:[%s2381_s20 + $0x108] ss:$16 sps:$4 sm:$0xff]  }
  0x8a   : > { %913 = vmatprep.subr.bf16.mxu0 %v1870_v58  ;;  %956 = vmatprep.subr.bf16.mxu1 %v1872_v59  ;;  %v637_v41 = vld [vmem:[%s2361_s24 + $0x8] sm:$0xff]  ;;  %v1938_v42 = vld [vmem:[%s2381_s20 + $0x124] ss:$16 sps:$4 sm:$0xff]   ;;  %v1936_v46 = vld [vmem:[%s2381_s20 + $0x120] ss:$16 sps:$4 sm:$0xff]  }
  0x8b   : > { %v1941_v43 = vld [vmem:[%s2381_s20 + $0x12c] ss:$16 sps:$4 sm:$0xff]   ;;  %v641_v45 = vpack.c.bf16 %v639_v44, %v637_v41  ;;  %v1939_v47 = vld [vmem:[%s2381_s20 + $0x128] ss:$16 sps:$4 sm:$0xff]   ;;  %v1944_v48 = vld [vmem:[%s2381_s20 + $0x144] ss:$16 sps:$4 sm:$0xff]  }
  0x8c   : > { %v1947_v49 = vld [vmem:[%s2381_s20 + $0x14c] ss:$16 sps:$4 sm:$0xff]   ;;  %v1942_v50 = vld [vmem:[%s2381_s20 + $0x140] ss:$16 sps:$4 sm:$0xff]   ;;  %v1945_v51 = vld [vmem:[%s2381_s20 + $0x148] ss:$16 sps:$4 sm:$0xff]  }
  0x8d   : > { %914 = vmatpush1.bf16.msra.mxu0 %v1874_v60  ;;  %957 = vmatpush1.bf16.msra.mxu1 %v1875_v61  ;;  %v1950_v52 = vld [vmem:[%s2381_s20 + $0x164] ss:$16 sps:$4 sm:$0xff]   ;;  %v1953_v53 = vld [vmem:[%s2381_s20 + $0x16c] ss:$16 sps:$4 sm:$0xff]   ;;  %v1948_v54 = vld [vmem:[%s2381_s20 + $0x160] ss:$16 sps:$4 sm:$0xff]  }
  0x8e   : > { %915 = vmatprep.subr.bf16.mxu0 %v1876_v62  ;;  %958 = vmatprep.subr.bf16.mxu1 %v1878_v63  ;;  %v1951_v55 = vld [vmem:[%s2381_s20 + $0x168] ss:$16 sps:$4 sm:$0xff]   ;;  %v1956_v56 = vld [vmem:[%s2381_s20 + $0x184] ss:$16 sps:$4 sm:$0xff]   ;;  %v1959_v57 = vld [vmem:[%s2381_s20 + $0x18c] ss:$16 sps:$4 sm:$0xff]  }
  0x8f   : > { %v1954_v58 = vld [vmem:[%s2381_s20 + $0x180] ss:$16 sps:$4 sm:$0xff]   ;;  %v1957_v59 = vld [vmem:[%s2381_s20 + $0x188] ss:$16 sps:$4 sm:$0xff]   ;;  %v1962_v60 = vld [vmem:[%s2381_s20 + $0x1a4] ss:$16 sps:$4 sm:$0xff]  }
  0x90   : > { %v1965_v61 = vld [vmem:[%s2381_s20 + $0x1ac] ss:$16 sps:$4 sm:$0xff]   ;;  %v1960_v62 = vld [vmem:[%s2381_s20 + $0x1a0] ss:$16 sps:$4 sm:$0xff]   ;;  %v1963_v63 = vld [vmem:[%s2381_s20 + $0x1a8] ss:$16 sps:$4 sm:$0xff]  }
  0x91   : > { %916 = vmatpush1.bf16.msra.mxu0 %v1880_v0  ;;  %959 = vmatpush1.bf16.msra.mxu1 %v1881_v1  ;;  %v1968_v0 = vld [vmem:[%s2381_s20 + $0x1c4] ss:$16 sps:$4 sm:$0xff]   ;;  %v1971_v1 = vld [vmem:[%s2381_s20 + $0x1cc] ss:$16 sps:$4 sm:$0xff]   ;;  %v1966_v2 = vld [vmem:[%s2381_s20 + $0x1c0] ss:$16 sps:$4 sm:$0xff]  }
  0x92   : > { %1307 = vmatprep.subr.bf16.mxu0 %v1884_v4  ;;  %1350 = vmatprep.subr.bf16.mxu1 %v1887_v5  ;;  %v1969_v3 = vld [vmem:[%s2381_s20 + $0x1c8] ss:$16 sps:$4 sm:$0xff]   ;;  %v1974_v4 = vld [vmem:[%s2381_s20 + $0x1e4] ss:$16 sps:$4 sm:$0xff]   ;;  %v1977_v5 = vld [vmem:[%s2381_s20 + $0x1ec] ss:$16 sps:$4 sm:$0xff]  }
  0x94   : > { %934 = vmatmul.mubr.bf16.vlgmr.msra.gmra.mrb[0].mxu0 %v644_v6  ;;  %977 = vmatmul.mubr.bf16.vlgmr.msra.gmra.mrb[0].mxu1 %v644_v6  ;;  %v1972_v6 = vld [vmem:[%s2381_s20 + $0x1e0] ss:$16 sps:$4 sm:$0xff]  }
  0x95   : > { %1308 = vmatpush1.bf16.msra.mxu0 %v1882_v7  ;;  %1351 = vmatpush1.bf16.msra.mxu1 %v1885_v8  ;;  %v1975_v7 = vld [vmem:[%s2381_s20 + $0x1e8] ss:$16 sps:$4 sm:$0xff]   ;;  %v636_v8 = vld [vmem:[%s2361_s24] sm:$0xff] }
  0x96   : > { %1309 = vmatprep.subr.bf16.mxu0 %v1890_v9  ;;  %1352 = vmatprep.subr.bf16.mxu1 %v1893_v10  ;;  %v638_v9 = vld [vmem:[%s2361_s24 + $0x10] sm:$0xff] }
  0x97   : > { %1339 = vmatprep.mubr.bf16.mxu0 %v641_v45  ;;  %1382 = vmatprep.mubr.bf16.mxu1 %v641_v45  ;;  %v640_v10 = vpack.c.bf16 %v638_v9, %v636_v8  ;;  %v1439_v9 = vld [vmem:[#allocation2] sm:$0xff] }
  0x99   : > { %1310 = vmatpush1.bf16.msra.mxu0 %v1888_v11  ;;  %1353 = vmatpush1.bf16.msra.mxu1 %v1891_v12  ;;  %v1395_v11 = vlaneseq }
  0x9a   : > { %1311 = vmatprep.subr.bf16.mxu0 %v1896_v13  ;;  %1354 = vmatprep.subr.bf16.mxu1 %v1899_v14 }
  0x9b   : > { %v1396_v12 = vshrl.u32 %v1395_v11, 7 }
  0x9d   : > { %1312 = vmatpush1.bf16.msra.mxu0 %v1894_v15  ;;  %1355 = vmatpush1.bf16.msra.mxu1 %v1897_v16  ;;  %v1397_v13 = vsub.s32 0, %v1396_v12  ;;  %v1405_v14 = vsub.s32 2, %v1396_v12  ;;  %v1393_v15 = vld [vmem:[%s615_s13] sm:$0xf]  ;;  %v1401_v16 = vsub.s32 1, %v1396_v12 }
  0x9e   : > { %1313 = vmatprep.subr.bf16.mxu0 %v1902_v17  ;;  %1356 = vmatprep.subr.bf16.mxu1 %v1905_v18  ;;  %v1409_v17 = vsub.s32 3, %v1396_v12  ;;  %v1440_v12 = vld [vmem:[#allocation2 + $0x8] sm:$0xff] }
  0x9f   : > { %v1398_v18 = vrot.slane %v1393_v15, %v1397_v13 }
  0xa1   : > { %1314 = vmatpush1.bf16.msra.mxu0 %v1900_v19  ;;  %1357 = vmatpush1.bf16.msra.mxu1 %v1903_v20  ;;  %v1406_v19 = vrot.slane %v1393_v15, %v1405_v14  ;;  %v1402_v20 = vrot.slane %v1393_v15, %v1401_v16 }
  0xa2   : > { %1315 = vmatprep.subr.bf16.mxu0 %v1908_v21  ;;  %1358 = vmatprep.subr.bf16.mxu1 %v1911_v22  ;;  %v1410_v21 = vrot.slane %v1393_v15, %v1409_v17  ;;  %v1441_v22 = vld [vmem:[%s620_s3] sm:$0xf]  ;;  %s1492_s3 = sld [smem:[#allocation3]] (!%p1761_p13)  ;;  %v2037_v15 = vmov (!%p1761_p13), 0  }
  0xa3   : > { %1978 = vset.pattern.permute.xlu0 (!%p1761_p13), %v2037_v15 }
  0xa5   : > { %1316 = vmatpush1.bf16.msra.mxu0 %v1906_v23  ;;  %1359 = vmatpush1.bf16.msra.mxu1 %v1909_v24 }
  0xa6   : > { %1317 = vmatprep.subr.bf16.mxu0 %v1914_v25  ;;  %1360 = vmatprep.subr.bf16.mxu1 %v1917_v26 }
  0xa9   : > { %1318 = vmatpush1.bf16.msra.mxu0 %v1912_v27  ;;  %1361 = vmatpush1.bf16.msra.mxu1 %v1915_v28 }
  0xaa   : > { %1319 = vmatprep.subr.bf16.mxu0 %v1920_v29  ;;  %1362 = vmatprep.subr.bf16.mxu1 %v1923_v30  ;;  %v1446_v29 = vrot.slane %v1441_v22, %v1397_v13 }
  0xad   : > { %1320 = vmatpush1.bf16.msra.mxu0 %v1918_v31  ;;  %1363 = vmatpush1.bf16.msra.mxu1 %v1921_v32  ;;  %v1450_v31 = vrot.slane %v1441_v22, %v1401_v16 }
  0xae   : > { %1321 = vmatprep.subr.bf16.mxu0 %v1926_v33  ;;  %1364 = vmatprep.subr.bf16.mxu1 %v1929_v34 }
  0xb1   : > { %1322 = vmatpush1.bf16.msra.mxu0 %v1924_v35  ;;  %1365 = vmatpush1.bf16.msra.mxu1 %v1927_v36 }
  0xb2   : > { %1323 = vmatprep.subr.bf16.mxu0 %v1932_v37  ;;  %1366 = vmatprep.subr.bf16.mxu1 %v1935_v38 }
  0xb5   : > { %1324 = vmatpush1.bf16.msra.mxu0 %v1930_v39  ;;  %1367 = vmatpush1.bf16.msra.mxu1 %v1933_v40 }
  0xb6   : > { %1325 = vmatprep.subr.bf16.mxu0 %v1938_v42  ;;  %1368 = vmatprep.subr.bf16.mxu1 %v1941_v43 }
  0xb9   : > { %1326 = vmatpush1.bf16.msra.mxu0 %v1936_v46  ;;  %1369 = vmatpush1.bf16.msra.mxu1 %v1939_v47 }
  0xba   : > { %1327 = vmatprep.subr.bf16.mxu0 %v1944_v48  ;;  %1370 = vmatprep.subr.bf16.mxu1 %v1947_v49  ;;  %v1454_v48 = vrot.slane %v1441_v22, %v1405_v14 }
  0xbd   : > { %1328 = vmatpush1.bf16.msra.mxu0 %v1942_v50  ;;  %1371 = vmatpush1.bf16.msra.mxu1 %v1945_v51 }
  0xbe   : > { %1329 = vmatprep.subr.bf16.mxu0 %v1950_v52  ;;  %1372 = vmatprep.subr.bf16.mxu1 %v1953_v53 }
  0xc1   : > { %1330 = vmatpush1.bf16.msra.mxu0 %v1948_v54  ;;  %1373 = vmatpush1.bf16.msra.mxu1 %v1951_v55  ;;  %v1458_v55 = vrot.slane %v1441_v22, %v1409_v17 }
  0xc2   : > { %1331 = vmatprep.subr.bf16.mxu0 %v1956_v56  ;;  %1374 = vmatprep.subr.bf16.mxu1 %v1959_v57 }
  0xc5   : > { %1332 = vmatpush1.bf16.msra.mxu0 %v1954_v58  ;;  %1375 = vmatpush1.bf16.msra.mxu1 %v1957_v59 }
  0xc6   : > { %1333 = vmatprep.subr.bf16.mxu0 %v1962_v60  ;;  %1376 = vmatprep.subr.bf16.mxu1 %v1965_v61 }
  0xc9   : > { %1334 = vmatpush1.bf16.msra.mxu0 %v1960_v62  ;;  %1377 = vmatpush1.bf16.msra.mxu1 %v1963_v63 }
  0xca   : > { %1335 = vmatprep.subr.bf16.mxu0 %v1968_v0  ;;  %1378 = vmatprep.subr.bf16.mxu1 %v1971_v1 }
  0xcd   : > { %1336 = vmatpush1.bf16.msra.mxu0 %v1966_v2  ;;  %1379 = vmatpush1.bf16.msra.mxu1 %v1969_v3 }
  0xce   : > { %1337 = vmatprep.subr.bf16.mxu0 %v1974_v4  ;;  %1380 = vmatprep.subr.bf16.mxu1 %v1977_v5 }
  0xd1   : > { %1338 = vmatpush1.bf16.msra.mxu0 %v1972_v6  ;;  %1381 = vmatpush1.bf16.msra.mxu1 %v1975_v7 }
  0xd4   : > { %1340 = vmatmul.mubr.bf16.vlgmr.msra.gmra.mrb[0].mxu0 %v640_v10  ;;  %1383 = vmatmul.mubr.bf16.vlgmr.msra.gmra.mrb[0].mxu1 %v640_v10 }
 0x1a7   : > { %v1341_v23 = vpop.f32.mrb[0].mxu0  ;;  %v1384_v24 = vpop.f32.mrb[0].mxu1 }
 0x1a8   : > { %v1415_v25 = vadd.f32 %v1398_v18, %v1341_v23  ;;  %v1417_v26 = vadd.f32 %v1406_v19, %v1384_v24  ;;  %v1343_v27 = vpop.f32.mrb[1].mxu0  ;;  %v1386_v28 = vpop.f32.mrb[1].mxu1 }
 0x1a9   : > { %v1416_v30 = vadd.f32 %v1402_v20, %v1343_v27  ;;  %v1418_v32 = vadd.f32 %v1410_v21, %v1386_v28  ;;  %v1345_v33 = vpop.f32.mrb[2].mxu0  ;;  %v1388_v34 = vpop.f32.mrb[2].mxu1 }
 0x1aa   : > { %v1423_v35 = vmul.f32 0.2, %v1415_v25  ;;  %v1425_v36 = vmul.f32 0.2, %v1417_v26  ;;  %v1419_v37 = vadd.f32 %v1398_v18, %v1345_v33  ;;  %v1421_v38 = vadd.f32 %v1406_v19, %v1388_v34  ;;  %v1347_v39 = vpop.f32.mrb[3].mxu0  ;;  %v1390_v40 = vpop.f32.mrb[3].mxu1 }
 0x1ab   : > { %v1424_v41 = vmul.f32 0.2, %v1416_v30  ;;  %v1426_v42 = vmul.f32 0.2, %v1418_v32  ;;  %v1420_v43 = vadd.f32 %v1402_v20, %v1347_v39  ;;  %v1422_v44 = vadd.f32 %v1410_v21, %v1390_v40 }
 0x1ac   : > { %v1431_v45 = vmax.f32 %v1415_v25, %v1423_v35  ;;  %v1427_v46 = vmul.f32 0.2, %v1419_v37  ;;  %v1429_v47 = vmul.f32 0.2, %v1421_v38  ;;  %v1433_v49 = vmax.f32 %v1417_v26, %v1425_v36 }
 0x1ad   : > { %v1432_v50 = vmax.f32 %v1416_v30, %v1424_v41  ;;  %v1428_v51 = vmul.f32 0.2, %v1420_v43  ;;  %v1430_v52 = vmul.f32 0.2, %v1422_v44  ;;  %v1434_v57 = vmax.f32 %v1418_v32, %v1426_v42 }
 0x1ae   : > { %v1463_v53 = vmul.f32 %v1446_v29, %v1431_v45  ;;  %v1435_v54 = vmax.f32 %v1419_v37, %v1427_v46  ;;  %v1437_v58 = vmax.f32 %v1421_v38, %v1429_v47  ;;  %v1465_v63 = vmul.f32 %v1454_v48, %v1433_v49 }
 0x1af   : > { %v1464_v56 = vmul.f32 %v1450_v31, %v1432_v50  ;;  %v1436_v59 = vmax.f32 %v1420_v43, %v1428_v51  ;;  %v1438_v62 = vmax.f32 %v1422_v44, %v1430_v52  ;;  %v1466_v2 = vmul.f32 %v1458_v55, %v1434_v57 }
 0x1b0   : > { %v1467_v60 = vmul.f32 %v1446_v29, %v1435_v54  ;;  %v1469_v1 = vmul.f32 %v1454_v48, %v1437_v58  ;;  %v1493_v18 = vstv (!%p1761_p13), %s1492_s3 }
 0x1b1   : > { %v1468_v61 = vmul.f32 %v1450_v31, %v1436_v59  ;;  %v1471_v0 = vadd.f32 %v1464_v56, %v1463_v53  ;;  %v1470_v6 = vmul.f32 %v1458_v55, %v1438_v62 }
 0x1b3   : > { %v1472_v3 = vadd.f32 %v1471_v0, %v1465_v63  ;;  %v1476_v4 = vadd.f32 %v1468_v61, %v1467_v60 }
 0x1b5   : > { %v1473_v5 = vadd.f32 %v1472_v3, %v1466_v2  ;;  %v1477_v7 = vadd.f32 %v1476_v4, %v1469_v1 }
 0x1b7   : > { %1474 = vadd.xlane.f32.xlu0 %v1473_v5  ;;  %v1478_v8 = vadd.f32 %v1477_v7, %v1470_v6 }
 0x1bb   : > { %1479 = vadd.xlane.f32.xlu0 %v1478_v8 }
 0x244   : > { %v1475_v10 = vpop.xlane.xlu0 %1474 }
 0x245   : > { %v1481_v11 = vadd.f32 %v1475_v10, %v1439_v9  ;;  %1489 = sbr.rel (%p1761_p13) target bundleno = 726 (0x2d6), region = 102 }
 0x247   : > { %1484 = vst.msk [vmem:[#allocation2] sm:$0xff] %vm1483_vm1, %v1481_v11 }
 0x248   : > { %v1480_v13 = vpop.xlane.xlu0 %1479 }
 0x249   : > { %v1482_v14 = vadd.f32 %v1480_v13, %v1440_v12 }
 0x24b   : > { %1485 = vst.msk [vmem:[#allocation2 + $0x8] sm:$0xff] %vm1483_vm1, %v1482_v14 }
 0x24e   : > { %v1490_v16 = vld [vmem:[#allocation2] sm:$0xff] }
 0x24f   : > { %v1494_v19 = vadd.f32 %v1493_v18, %v1490_v16 }
 0x251   : > { %1498 = vperm.xlu0 %1978, %v1494_v19  }
 0x252   : > { %v1491_v17 = vld [vmem:[#allocation2 + $0x8] sm:$0xff] }
 0x253   : > { %v1495_v20 = vadd.f32 %v1493_v18, %v1491_v17 }
 0x255   : > { %1503 = vperm.xlu0 %1978, %v1495_v20  }
 0x2d0   : > { %v1499_v21 = vpop.permute.xlu0 %1498 }
 0x2d1   : > { %1506 = vst [vmem:[%s2379_s6] sm:$0xff] %v1499_v21 }
 0x2d4   : > { %v1504_v22 = vpop.permute.xlu0 %1503 }
 0x2d5   : > { %1507 = vst [vmem:[%s2379_s6 + $0x8] sm:$0xff] %v1504_v22 }
 0x2d6 PF: > { %s18_s9 = sadd.s32 1, %s2033_s9   ;;  %s2538_s19 = sld [smem:[#allocation6_spill]] }
 0x2d7   : > { %p15_p0 = scmp.ge.s32.totalorder %s18_s9, 6   ;;  %s2539_s21 = sld [smem:[#allocation7_spill]] }
 0x2d8   : > { %s2540_s26 = smov %s2013_s27  ;;  %s2541_s27 = smov %s2134_s14 }
 0x2d9   : > { %s2542_s28 = smov %s2025_s30  ;;  %s2543_s29 = smov %s2029_s8 }
 0x2da   :  { %17 = sbr.rel (!%p15_p0) target bundleno = 8 (0x8), region = 157 }
 0x2dc   : > { %s2544_s30 = smov %s2538_s19 }
 0x2dd   : > { %s2545_s8 = smov %s2539_s21 }

</bundles_post_ra>
